<compile_context>
chip_gen: v5e
topology: v5e:2x2
jax: 0.10.0
libtpu: 0.0.40
codegen_flags: <defaults>
</compile_context>

<pallas_src>
import numpy as np
import jax
import jax.numpy as jnp
from jax.experimental import pallas as pl
from jax.experimental.pallas import tpu as pltpu

# ---------------- static problem sizes ----------------
N, CIN, H, W = 2, 4, 16, 16
COUT, KSZ, PAD = 8, 3, 1
HP, WP = H + 2 * PAD, W + 2 * PAD        # 18, 18 (padded spatial)
HO, WO = H // 2, W // 2                  # 8, 8   (after 2x2 maxpool)
LIN_IN = COUT * HO * WO                  # 512
LIN_OUT = 16
BN_EPS = 1e-5

N_BLK = 2                                # batch elements folded per grid step
R_HALF = N_BLK * HO                      # 16 rows per output-row parity (n*8 + ho)
R_CONV = 2 * R_HALF                      # 32 conv matmul rows (even-h half | odd-h half)
K_CONV = KSZ * CIN * WP                  # 216 contraction dim (kh, ci, wp)
POOL_C = COUT * WO                       # 64 compact pooled lanes (co*8 + wo)
ODD_OFF = 128                            # lane offset of the odd-w block (vreg aligned)
N_CONV = ODD_OFF + POOL_C                # 192 conv matmul columns; cols 64..127 are zero
PD = HO * LIN_OUT                        # 128 block-diagonal linear columns (ho*16 + o)


# ---------------- fused Pallas kernel ----------------
def fused_forward_kernel(xcat_ref, wconv_ref, cbias_ref, scale_ref, shift_ref,
                         lwbd_ref, mask_ref, sel_ref, fold_ref, lbias_ref, o_ref):
    # xcat_ref : VMEM (32, 216)  im2row slab: rows 0..15 -> even output rows h=2ho,
    #                            rows 16..31 -> odd rows h=2ho+1; lanes = (kh, ci, wp)
    # wconv_ref: VMEM (216, 192) banded conv weights; cols [0:64] even-w, [128:192] odd-w
    # cbias_ref: VMEM (1, 192)   conv bias, lane-expanded to both w-parity blocks
    # scale_ref: VMEM (1, 64)    folded BN scale (per co, repeated over wo)
    # shift_ref: VMEM (1, 64)    folded BN shift
    # lwbd_ref : VMEM (64, 128)  linear weights, block-diagonal over ho (cols ho*16 + o)
    # mask_ref : VMEM (16, 128)  selects column block j == ho for row n*8+ho
    # sel_ref  : VMEM (2, 16)    per-batch row-sum selector
    # fold_ref : VMEM (128, 16)  stacked identities: sums the 8 ho column blocks
    # lbias_ref: VMEM (1, 16)    linear bias
    # o_ref    : VMEM (2, 16)    output rows for this batch block

    # ---- conv 3x3 (stride 1, pad 1) for both batch elems & both row parities: 1 MXU op
    acc = jnp.dot(xcat_ref[...], wconv_ref[...],
                  preferred_element_type=jnp.float32)              # (32, 192)

    # ---- 2x2 max pool, stride 2: row pairs live in the two row halves, column pairs
    #      live in the two vreg-aligned lane blocks -> two elementwise maxima.
    hm = jnp.maximum(acc[:R_HALF, :], acc[R_HALF:, :]) + cbias_ref[...]   # (16, 192)
    pooled = jnp.maximum(hm[:, :POOL_C], hm[:, ODD_OFF:ODD_OFF + POOL_C])  # (16, 64)
    # pooled[n*8+ho, co*8+wo] == maxpool(conv + bias)[n, co, ho, wo] (fully compact).

    # ---- BatchNorm (inference, folded) + ReLU ----
    feat = jnp.maximum(pooled * scale_ref[...] + shift_ref[...], 0.0)      # (16, 64)

    # ---- Flatten + Linear as one MXU push over the block-diagonal weights ----
    p = jnp.dot(feat, lwbd_ref[...], preferred_element_type=jnp.float32)   # (16, 128)
    red = jnp.dot(sel_ref[...], p * mask_ref[...],
                  preferred_element_type=jnp.float32)                      # (2, 128)
    out = jnp.dot(red, fold_ref[...], preferred_element_type=jnp.float32)  # (2, 16)
    o_ref[...] = out + lbias_ref[...]


# ---------------- wrapper: layout plumbing + parameter repacking ----------------
def _pack_activations(x):
    # Build the (32, 216) im2row slab:
    #   row r = n*8 + ho (rows 0..15: h = 2*ho; rows 16..31: h = 2*ho + 1)
    #   lane  = kh*72 + ci*18 + wp  ->  x_padded[n, ci, h + kh, wp]
    xp = jnp.pad(x, ((0, 0), (0, 0), (PAD, PAD), (PAD, PAD)))     # (N, CIN, 18, 18)
    base = 2 * np.arange(HO)                                       # even output rows
    planes = []
    for shift in range(KSZ + 1):                                   # padded rows 2ho+shift
        g = xp[:, :, base + shift, :]                              # (N, CIN, 8, 18)
        g = jnp.transpose(g, (0, 2, 1, 3))                         # (N, 8, CIN, 18)
        planes.append(g.reshape(N_BLK * HO, CIN * WP))             # (16, 72)
    even_rows = jnp.concatenate(planes[0:3], axis=1)               # kh = 0,1,2
    odd_rows = jnp.concatenate(planes[1:4], axis=1)                # kh+1 = 1,2,3
    return jnp.concatenate([even_rows, odd_rows], axis=0)          # (32, 216)


def _build_conv_weight_matrix(conv_w):
    # Banded matrix: Wbig[kh*72 + ci*18 + wp, col] with
    #   col =        co*8 + wo -> conv_w[co, ci, kh, wp - 2*wo]       (even w = 2*wo)
    #   col = 128 +  co*8 + wo -> conv_w[co, ci, kh, wp - (2*wo + 1)]  (odd  w = 2*wo+1)
    # Columns 64..127 are zero and exist only so the odd-w block starts at lane 128
    # (vreg-aligned slice in the kernel); they are never read downstream.
    wp_i = np.arange(WP)[:, None]                                  # (18, 1)
    wo_i = np.arange(WO)[None, :]                                  # (1, 8)

    def banded(offset):
        kw = wp_i - (2 * wo_i + offset)                            # (18, 8)
        valid = ((kw >= 0) & (kw < KSZ)).astype(np.float32)
        g = conv_w[:, :, :, np.clip(kw, 0, KSZ - 1)]               # (COUT, CIN, KSZ, 18, 8)
        g = g * jnp.asarray(valid)[None, None, None, :, :]
        g = jnp.transpose(g, (2, 1, 3, 0, 4))                      # (kh, ci, wp, co, wo)
        return g.reshape(K_CONV, POOL_C)                           # (216, 64)

    zeros_mid = jnp.zeros((K_CONV, ODD_OFF - POOL_C), jnp.float32)
    return jnp.concatenate([banded(0), zeros_mid, banded(1)], axis=1)   # (216, 192)


def model_maker_forward(x, conv_w, conv_b, bn_scale, bn_shift, lin_w, lin_b):
    n = x.shape[0]
    assert n == N_BLK, "kernel is specialized for batch=2 folded into one grid step"

    # activations -> lane-dense im2row slab (pure layout plumbing, no arithmetic)
    xcat = _pack_activations(x)                                    # (32, 216)

    # parameter repacking
    wconv = _build_conv_weight_matrix(conv_w)                      # (216, 192)
    bias_blk = jnp.repeat(conv_b, WO)                              # (64,)
    cbias = jnp.concatenate(
        [bias_blk, jnp.zeros((ODD_OFF - POOL_C,), jnp.float32), bias_blk])[None, :]  # (1,192)
    scale = jnp.repeat(bn_scale, WO)[None, :]                      # (1, 64)
    shift = jnp.repeat(bn_shift, WO)[None, :]                      # (1, 64)

    # linear weight (16, 512) -> block-diagonal layout rows co*8+wo, cols ho*16+o
    # (torch.nn.Flatten order co*64 + ho*8 + wo is preserved exactly; no junk columns)
    lw4 = lin_w.reshape(LIN_OUT, COUT, HO, WO)                     # [o, co, ho, wo]
    lw_bd = jnp.transpose(lw4, (1, 3, 2, 0)).reshape(POOL_C, PD)   # (64, 128)
    lbias = lin_b[None, :]                                         # (1, 16)

    # constant selection matrices (block-diagonal mask, per-batch row sum, ho fold)
    mask = jnp.asarray((np.arange(R_HALF)[:, None] % HO ==
                        np.arange(PD)[None, :] // LIN_OUT).astype(np.float32))  # (16,128)
    sel = jnp.asarray((np.arange(N_BLK)[:, None] ==
                       np.arange(R_HALF)[None, :] // HO).astype(np.float32))    # (2,16)
    foldw = jnp.asarray(np.tile(np.eye(LIN_OUT, dtype=np.float32), (HO, 1)))    # (128,16)

    out = pl.pallas_call(
        fused_forward_kernel,
        out_shape=jax.ShapeDtypeStruct((n, LIN_OUT), jnp.float32),
        grid_spec=pltpu.PrefetchScalarGridSpec(
            num_scalar_prefetch=0,
            grid=(n // N_BLK,),                                    # whole batch in 1 step
            in_specs=[
                pl.BlockSpec((R_CONV, K_CONV), lambda b: (b, 0)),
                pl.BlockSpec((K_CONV, N_CONV), lambda b: (0, 0)),
                pl.BlockSpec((1, N_CONV), lambda b: (0, 0)),
                pl.BlockSpec((1, POOL_C), lambda b: (0, 0)),
                pl.BlockSpec((1, POOL_C), lambda b: (0, 0)),
                pl.BlockSpec((POOL_C, PD), lambda b: (0, 0)),
                pl.BlockSpec((R_HALF, PD), lambda b: (0, 0)),
                pl.BlockSpec((N_BLK, R_HALF), lambda b: (0, 0)),
                pl.BlockSpec((PD, LIN_OUT), lambda b: (0, 0)),
                pl.BlockSpec((1, LIN_OUT), lambda b: (0, 0)),
            ],
            out_specs=pl.BlockSpec((N_BLK, LIN_OUT), lambda b: (b, 0)),
        ),
        # Single grid step: nothing to split across cores here; for larger batches the
        # batch-block axis could be marked pltpu.CORE_PARALLEL on v7x.
        compiler_params=pltpu.CompilerParams(dimension_semantics=("arbitrary",)),
    )(xcat, wconv, cbias, scale, shift, lw_bd, mask, sel, foldw, lbias)

    return out


# ---------------- pure-JAX reference ----------------
def reference(x, conv_w, conv_b, bn_scale, bn_shift, lin_w, lin_b):
    y = jax.lax.conv_general_dilated(
        x, conv_w, window_strides=(1, 1), padding=((PAD, PAD), (PAD, PAD)),
        dimension_numbers=('NCHW', 'OIHW', 'NCHW'),
        precision=jax.lax.Precision.HIGHEST)
    y = y + conv_b[None, :, None, None]
    y = jax.lax.reduce_window(y, -jnp.inf, jax.lax.max,
                              (1, 1, 2, 2), (1, 1, 2, 2), 'VALID')
    y = y * bn_scale[None, :, None, None] + bn_shift[None, :, None, None]
    y = jnp.maximum(y, 0.0)
    yf = y.reshape(y.shape[0], -1)
    return jnp.dot(yf, lin_w.T, precision=jax.lax.Precision.HIGHEST) + lin_b


if __name__ == "__main__":
    key = jax.random.PRNGKey(0)
    ks = jax.random.split(key, 9)

    x = jax.random.normal(ks[0], (N, CIN, H, W), jnp.float32)

    # deterministic "parameters" (shapes per nn.Conv2d / nn.BatchNorm2d / nn.Linear)
    conv_w = 0.1 * jax.random.normal(ks[1], (COUT, CIN, KSZ, KSZ), jnp.float32)
    conv_b = 0.1 * jax.random.normal(ks[2], (COUT,), jnp.float32)
    bn_gamma = 1.0 + 0.1 * jax.random.normal(ks[3], (COUT,), jnp.float32)
    bn_beta = 0.1 * jax.random.normal(ks[4], (COUT,), jnp.float32)
    bn_mean = 0.1 * jax.random.normal(ks[5], (COUT,), jnp.float32)
    bn_var = jnp.abs(jax.random.normal(ks[6], (COUT,), jnp.float32)) + 0.5
    lin_w = 0.05 * jax.random.normal(ks[7], (LIN_OUT, LIN_IN), jnp.float32)
    lin_b = 0.1 * jax.random.normal(ks[8], (LIN_OUT,), jnp.float32)

    # fold BatchNorm (inference mode) into per-channel scale/shift
    bn_scale = bn_gamma * jax.lax.rsqrt(bn_var + BN_EPS)
    bn_shift = bn_beta - bn_mean * bn_scale

    fwd = jax.jit(model_maker_forward)
    out = fwd(x, conv_w, conv_b, bn_scale, bn_shift, lin_w, lin_b)
    out = jax.block_until_ready(out)

    ref = reference(x, conv_w, conv_b, bn_scale, bn_shift, lin_w, lin_b)
    assert out.shape == (N, LIN_OUT)
    if not bool(jnp.allclose(out, ref, rtol=1e-2, atol=1e-2)):
        raise AssertionError("Pallas output does not match JAX reference")

    # TODO(synk): BatchNorm training-mode (batch statistics) and Dropout training-mode
    # masking are not represented; the kernel implements eval/inference semantics.
    print("KERNEL_OK")
</pallas_src>

<mosaic_0001>
module attributes {stable_mosaic.version = 11 : i64} {
  func.func @fused_forward_kernel(%arg0: i32, %arg1: memref<32x216xf32, #tpu.memory_space<vmem>>, %arg2: memref<216x192xf32, #tpu.memory_space<vmem>>, %arg3: memref<1x192xf32, #tpu.memory_space<vmem>>, %arg4: memref<1x64xf32, #tpu.memory_space<vmem>>, %arg5: memref<1x64xf32, #tpu.memory_space<vmem>>, %arg6: memref<64x128xf32, #tpu.memory_space<vmem>>, %arg7: memref<16x128xf32, #tpu.memory_space<vmem>>, %arg8: memref<2x16xf32, #tpu.memory_space<vmem>>, %arg9: memref<128x16xf32, #tpu.memory_space<vmem>>, %arg10: memref<1x16xf32, #tpu.memory_space<vmem>>, %arg11: memref<2x16xf32, #tpu.memory_space<vmem>>) attributes {dimension_semantics = [#tpu.dimension_semantics<arbitrary>], iteration_bounds = array<i64: 1>, scalar_prefetch = 0 : i64, scratch_operands = 0 : i64, tpu.core_type = #tpu.core_type<tc>, window_params = [{transform_indices = @transform_0, window_bounds = array<i64: 32, 216>}, {pipeline_mode = #tpu.pipeline_mode<synchronous>, transform_indices = @transform_1, window_bounds = array<i64: 216, 192>}, {pipeline_mode = #tpu.pipeline_mode<synchronous>, transform_indices = @transform_2, window_bounds = array<i64: 1, 192>}, {pipeline_mode = #tpu.pipeline_mode<synchronous>, transform_indices = @transform_3, window_bounds = array<i64: 1, 64>}, {pipeline_mode = #tpu.pipeline_mode<synchronous>, transform_indices = @transform_4, window_bounds = array<i64: 1, 64>}, {pipeline_mode = #tpu.pipeline_mode<synchronous>, transform_indices = @transform_5, window_bounds = array<i64: 64, 128>}, {pipeline_mode = #tpu.pipeline_mode<synchronous>, transform_indices = @transform_6, window_bounds = array<i64: 16, 128>}, {pipeline_mode = #tpu.pipeline_mode<synchronous>, transform_indices = @transform_7, window_bounds = array<i64: 2, 16>}, {pipeline_mode = #tpu.pipeline_mode<synchronous>, transform_indices = @transform_8, window_bounds = array<i64: 128, 16>}, {pipeline_mode = #tpu.pipeline_mode<synchronous>, transform_indices = @transform_9, window_bounds = array<i64: 1, 16>}, {transform_indices = @transform_10, window_bounds = array<i64: 2, 16>}]} {
    %c0 = arith.constant 0 : index
    %c0_0 = arith.constant 0 : index
    %0 = vector.load %arg1[%c0, %c0_0] : memref<32x216xf32, #tpu.memory_space<vmem>>, vector<32x216xf32>
    %c0_1 = arith.constant 0 : index
    %c0_2 = arith.constant 0 : index
    %1 = vector.load %arg2[%c0_1, %c0_2] : memref<216x192xf32, #tpu.memory_space<vmem>>, vector<216x192xf32>
    %cst = arith.constant dense<0.000000e+00> : vector<32x192xf32>
    %2 = tpu.matmul %0, %1, %cst {dimension_numbers = #tpu.dot_dimension_numbers<[1], [0], [0], [1], [0, 0, 1, 1], [], []>} : vector<32x216xf32>, vector<216x192xf32>, vector<32x192xf32> -> vector<32x192xf32>
    %3 = vector.extract_strided_slice %2 {offsets = [0, 0], sizes = [16, 192], strides = [1, 1]} : vector<32x192xf32> to vector<16x192xf32>
    %4 = vector.extract_strided_slice %2 {offsets = [16, 0], sizes = [16, 192], strides = [1, 1]} : vector<32x192xf32> to vector<16x192xf32>
    %5 = arith.maximumf %3, %4 : vector<16x192xf32>
    %c0_3 = arith.constant 0 : index
    %c0_4 = arith.constant 0 : index
    %6 = vector.load %arg3[%c0_3, %c0_4] : memref<1x192xf32, #tpu.memory_space<vmem>>, vector<1x192xf32>
    %7 = vector.broadcast %6 : vector<1x192xf32> to vector<16x192xf32>
    %8 = arith.addf %5, %7 : vector<16x192xf32>
    %9 = vector.extract_strided_slice %8 {offsets = [0, 0], sizes = [16, 64], strides = [1, 1]} : vector<16x192xf32> to vector<16x64xf32>
    %10 = vector.extract_strided_slice %8 {offsets = [0, 128], sizes = [16, 64], strides = [1, 1]} : vector<16x192xf32> to vector<16x64xf32>
    %11 = arith.maximumf %9, %10 : vector<16x64xf32>
    %c0_5 = arith.constant 0 : index
    %c0_6 = arith.constant 0 : index
    %12 = vector.load %arg4[%c0_5, %c0_6] : memref<1x64xf32, #tpu.memory_space<vmem>>, vector<1x64xf32>
    %13 = vector.broadcast %12 : vector<1x64xf32> to vector<16x64xf32>
    %14 = arith.mulf %11, %13 : vector<16x64xf32>
    %c0_7 = arith.constant 0 : index
    %c0_8 = arith.constant 0 : index
    %15 = vector.load %arg5[%c0_7, %c0_8] : memref<1x64xf32, #tpu.memory_space<vmem>>, vector<1x64xf32>
    %16 = vector.broadcast %15 : vector<1x64xf32> to vector<16x64xf32>
    %17 = arith.addf %14, %16 : vector<16x64xf32>
    %cst_9 = arith.constant 0.000000e+00 : f32
    %18 = vector.broadcast %cst_9 : f32 to vector<16x64xf32>
    %19 = arith.maximumf %17, %18 : vector<16x64xf32>
    %c0_10 = arith.constant 0 : index
    %c0_11 = arith.constant 0 : index
    %20 = vector.load %arg6[%c0_10, %c0_11] : memref<64x128xf32, #tpu.memory_space<vmem>>, vector<64x128xf32>
    %cst_12 = arith.constant dense<0.000000e+00> : vector<16x128xf32>
    %21 = tpu.matmul %19, %20, %cst_12 {dimension_numbers = #tpu.dot_dimension_numbers<[1], [0], [0], [1], [0, 0, 1, 1], [], []>} : vector<16x64xf32>, vector<64x128xf32>, vector<16x128xf32> -> vector<16x128xf32>
    %c0_13 = arith.constant 0 : index
    %c0_14 = arith.constant 0 : index
    %22 = vector.load %arg8[%c0_13, %c0_14] : memref<2x16xf32, #tpu.memory_space<vmem>>, vector<2x16xf32>
    %c0_15 = arith.constant 0 : index
    %c0_16 = arith.constant 0 : index
    %23 = vector.load %arg7[%c0_15, %c0_16] : memref<16x128xf32, #tpu.memory_space<vmem>>, vector<16x128xf32>
    %24 = arith.mulf %21, %23 : vector<16x128xf32>
    %cst_17 = arith.constant dense<0.000000e+00> : vector<2x128xf32>
    %25 = tpu.matmul %22, %24, %cst_17 {dimension_numbers = #tpu.dot_dimension_numbers<[1], [0], [0], [1], [0, 0, 1, 1], [], []>} : vector<2x16xf32>, vector<16x128xf32>, vector<2x128xf32> -> vector<2x128xf32>
    %c0_18 = arith.constant 0 : index
    %c0_19 = arith.constant 0 : index
    %26 = vector.load %arg9[%c0_18, %c0_19] : memref<128x16xf32, #tpu.memory_space<vmem>>, vector<128x16xf32>
    %cst_20 = arith.constant dense<0.000000e+00> : vector<2x16xf32>
    %27 = tpu.matmul %25, %26, %cst_20 {dimension_numbers = #tpu.dot_dimension_numbers<[1], [0], [0], [1], [0, 0, 1, 1], [], []>} : vector<2x128xf32>, vector<128x16xf32>, vector<2x16xf32> -> vector<2x16xf32>
    %c0_21 = arith.constant 0 : index
    %c0_22 = arith.constant 0 : index
    %28 = vector.load %arg10[%c0_21, %c0_22] : memref<1x16xf32, #tpu.memory_space<vmem>>, vector<1x16xf32>
    %29 = vector.broadcast %28 : vector<1x16xf32> to vector<2x16xf32>
    %30 = arith.addf %27, %29 : vector<2x16xf32>
    %c0_23 = arith.constant 0 : index
    %c0_24 = arith.constant 0 : index
    %31 = vector.load %arg11[%c0_23, %c0_24] : memref<2x16xf32, #tpu.memory_space<vmem>>, vector<2x16xf32>
    tpu.vector_store %arg11[%c0_23, %c0_24], %30 {strides = array<i32>} : memref<2x16xf32, #tpu.memory_space<vmem>>, vector<2x16xf32>,
    return
  }
  func.func @transform_0(%arg0: i32) -> (i32, i32) {
    %c0_i32 = arith.constant 0 : i32
    %c0_i32_0 = arith.constant 0 : i32
    return %arg0, %c0_i32 : i32, i32
  }
  func.func @transform_1(%arg0: i32) -> (i32, i32) {
    %c0_i32 = arith.constant 0 : i32
    %c0_i32_0 = arith.constant 0 : i32
    %c0_i32_1 = arith.constant 0 : i32
    return %c0_i32, %c0_i32_0 : i32, i32
  }
  func.func @transform_2(%arg0: i32) -> (i32, i32) {
    %c0_i32 = arith.constant 0 : i32
    %c0_i32_0 = arith.constant 0 : i32
    %c0_i32_1 = arith.constant 0 : i32
    return %c0_i32, %c0_i32_0 : i32, i32
  }
  func.func @transform_3(%arg0: i32) -> (i32, i32) {
    %c0_i32 = arith.constant 0 : i32
    %c0_i32_0 = arith.constant 0 : i32
    %c0_i32_1 = arith.constant 0 : i32
    return %c0_i32, %c0_i32_0 : i32, i32
  }
  func.func @transform_4(%arg0: i32) -> (i32, i32) {
    %c0_i32 = arith.constant 0 : i32
    %c0_i32_0 = arith.constant 0 : i32
    %c0_i32_1 = arith.constant 0 : i32
    return %c0_i32, %c0_i32_0 : i32, i32
  }
  func.func @transform_5(%arg0: i32) -> (i32, i32) {
    %c0_i32 = arith.constant 0 : i32
    %c0_i32_0 = arith.constant 0 : i32
    %c0_i32_1 = arith.constant 0 : i32
    return %c0_i32, %c0_i32_0 : i32, i32
  }
  func.func @transform_6(%arg0: i32) -> (i32, i32) {
    %c0_i32 = arith.constant 0 : i32
    %c0_i32_0 = arith.constant 0 : i32
    %c0_i32_1 = arith.constant 0 : i32
    return %c0_i32, %c0_i32_0 : i32, i32
  }
  func.func @transform_7(%arg0: i32) -> (i32, i32) {
    %c0_i32 = arith.constant 0 : i32
    %c0_i32_0 = arith.constant 0 : i32
    %c0_i32_1 = arith.constant 0 : i32
    return %c0_i32, %c0_i32_0 : i32, i32
  }
  func.func @transform_8(%arg0: i32) -> (i32, i32) {
    %c0_i32 = arith.constant 0 : i32
    %c0_i32_0 = arith.constant 0 : i32
    %c0_i32_1 = arith.constant 0 : i32
    return %c0_i32, %c0_i32_0 : i32, i32
  }
  func.func @transform_9(%arg0: i32) -> (i32, i32) {
    %c0_i32 = arith.constant 0 : i32
    %c0_i32_0 = arith.constant 0 : i32
    %c0_i32_1 = arith.constant 0 : i32
    return %c0_i32, %c0_i32_0 : i32, i32
  }
  func.func @transform_10(%arg0: i32) -> (i32, i32) {
    %c0_i32 = arith.constant 0 : i32
    %c0_i32_0 = arith.constant 0 : i32
    return %arg0, %c0_i32 : i32, i32
  }
}

</mosaic_0001>

<bundles_post_ra>
// kernel: model_maker_forward.1
= control target key start
LH: loop header
LB: loop body
LE: loop exit
PB: predicated region body
PF: predicated region fallthrough
CT: control target
= control target key end

     0   :  { %s769_s0 = inlined_call_operand.vmem [shape: f32[32,216], index: 0, kind: input, shape index: {}]   ;;  %s770_s1 = inlined_call_operand.vmem [shape: f32[216,192], index: 1, kind: input, shape index: {}]   ;;  %s771_s2 = inlined_call_operand.vmem [shape: f32[1,192], index: 2, kind: input, shape index: {}]   ;;  %s772_s3 = inlined_call_operand.vmem [shape: f32[1,64], index: 3, kind: input, shape index: {}]   ;;  %s773_s4 = inlined_call_operand.vmem [shape: f32[1,64], index: 4, kind: input, shape index: {}]   ;;  %s774_s5 = inlined_call_operand.vmem [shape: f32[64,128], index: 5, kind: input, shape index: {}]   ;;  %s775_s6 = inlined_call_operand.vmem [shape: f32[16,128], index: 6, kind: input, shape index: {}]   ;;  %s776_s7 = inlined_call_operand.vmem [shape: f32[2,16], index: 7, kind: input, shape index: {}]   ;;  %s777_s8 = inlined_call_operand.vmem [shape: f32[128,16], index: 8, kind: input, shape index: {}]   ;;  %s778_s9 = inlined_call_operand.vmem [shape: f32[1,16], index: 9, kind: input, shape index: {}]   ;;  %s779_s10 = inlined_call_operand.hbm [shape: f32[2,16], index: 10, kind: output, shape index: {}]  }
   0x1   :  { %v74_v0 = vld [vmem:[%s770_s1 + $0xf0] sm:$0xff]  ;;  %v75_v1 = vld [vmem:[%s770_s1 + $0xf8] sm:$0xff]  ;;  %v72_v2 = vld [vmem:[%s770_s1 + $0xe0] sm:$0xff] }
   0x2   :  { %111 = vmatpush.msra.mxu0 %v74_v0  ;;  %169 = vmatpush.msra.mxu2 %v75_v1  ;;  %v73_v3 = vld [vmem:[%s770_s1 + $0xe8] sm:$0xff]  ;;  %v70_v4 = vld [vmem:[%s770_s1 + $0xd0] sm:$0xff]  ;;  %v71_v5 = vld [vmem:[%s770_s1 + $0xd8] sm:$0xff] }
   0x3   :  { %v96_v6 = vld [vmem:[%s770_s1 + $0x1a0] sm:$0xff]  ;;  %v69_v8 = vld [vmem:[%s770_s1 + $0xc8] sm:$0xff]  ;;  %v94_v10 = vld [vmem:[%s770_s1 + $0x190] sm:$0xff] }
   0x4   :  { %112 = vmatpush.msra.mxu0 %v72_v2  ;;  %170 = vmatpush.msra.mxu2 %v73_v3  ;;  %v68_v7 = vld [vmem:[%s770_s1 + $0xc0] sm:$0xff]  ;;  %v97_v9 = vld [vmem:[%s770_s1 + $0x1a8] sm:$0xff]  ;;  %v95_v11 = vld [vmem:[%s770_s1 + $0x198] sm:$0xff] }
   0x5   :  { %145 = vmatpush.msra.mxu1 %v96_v6  ;;  %v66_v12 = vld [vmem:[%s770_s1 + $0xb0] sm:$0xff]  ;;  %v67_v13 = vld [vmem:[%s770_s1 + $0xb8] sm:$0xff]  ;;  %203 = vmatpush.msra.mxu3 %v97_v9  ;;  %v92_v14 = vld [vmem:[%s770_s1 + $0x180] sm:$0xff] }
   0x6   :  { %113 = vmatpush.msra.mxu0 %v70_v4  ;;  %171 = vmatpush.msra.mxu2 %v71_v5  ;;  %v93_v15 = vld [vmem:[%s770_s1 + $0x188] sm:$0xff]  ;;  %v90_v16 = vld [vmem:[%s770_s1 + $0x170] sm:$0xff]  ;;  %v64_v17 = vld [vmem:[%s770_s1 + $0xa0] sm:$0xff] }
   0x7   :  { %146 = vmatpush.msra.mxu1 %v94_v10  ;;  %v65_v18 = vld [vmem:[%s770_s1 + $0xa8] sm:$0xff]  ;;  %204 = vmatpush.msra.mxu3 %v95_v11  ;;  %v91_v19 = vld [vmem:[%s770_s1 + $0x178] sm:$0xff]  ;;  %v88_v20 = vld [vmem:[%s770_s1 + $0x160] sm:$0xff] }
   0x8   :  { %114 = vmatpush.msra.mxu0 %v68_v7  ;;  %172 = vmatpush.msra.mxu2 %v69_v8  ;;  %v62_v21 = vld [vmem:[%s770_s1 + $0x90] sm:$0xff]  ;;  %v63_v22 = vld [vmem:[%s770_s1 + $0x98] sm:$0xff]  ;;  %v89_v23 = vld [vmem:[%s770_s1 + $0x168] sm:$0xff] }
   0x9   :  { %147 = vmatpush.msra.mxu1 %v92_v14  ;;  %205 = vmatpush.msra.mxu3 %v93_v15  ;;  %v86_v24 = vld [vmem:[%s770_s1 + $0x150] sm:$0xff]  ;;  %v60_v25 = vld [vmem:[%s770_s1 + $0x80] sm:$0xff]  ;;  %v61_v26 = vld [vmem:[%s770_s1 + $0x88] sm:$0xff] }
   0xa   :  { %115 = vmatpush.msra.mxu0 %v66_v12  ;;  %173 = vmatpush.msra.mxu2 %v67_v13  ;;  %v87_v27 = vld [vmem:[%s770_s1 + $0x158] sm:$0xff]  ;;  %v84_v28 = vld [vmem:[%s770_s1 + $0x140] sm:$0xff]  ;;  %v58_v29 = vld [vmem:[%s770_s1 + $0x70] sm:$0xff] }
   0xb   :  { %148 = vmatpush.msra.mxu1 %v90_v16  ;;  %206 = vmatpush.msra.mxu3 %v91_v19  ;;  %v59_v30 = vld [vmem:[%s770_s1 + $0x78] sm:$0xff]  ;;  %v85_v31 = vld [vmem:[%s770_s1 + $0x148] sm:$0xff]  ;;  %v82_v32 = vld [vmem:[%s770_s1 + $0x130] sm:$0xff] }
   0xc   :  { %116 = vmatpush.msra.mxu0 %v64_v17  ;;  %174 = vmatpush.msra.mxu2 %v65_v18  ;;  %v56_v33 = vld [vmem:[%s770_s1 + $0x60] sm:$0xff]  ;;  %v57_v34 = vld [vmem:[%s770_s1 + $0x68] sm:$0xff]  ;;  %v83_v35 = vld [vmem:[%s770_s1 + $0x138] sm:$0xff] }
   0xd   :  { %149 = vmatpush.msra.mxu1 %v88_v20  ;;  %207 = vmatpush.msra.mxu3 %v89_v23  ;;  %v80_v36 = vld [vmem:[%s770_s1 + $0x120] sm:$0xff]  ;;  %v54_v37 = vld [vmem:[%s770_s1 + $0x50] sm:$0xff]  ;;  %v55_v38 = vld [vmem:[%s770_s1 + $0x58] sm:$0xff] }
   0xe   :  { %117 = vmatpush.msra.mxu0 %v62_v21  ;;  %175 = vmatpush.msra.mxu2 %v63_v22  ;;  %v52_v39 = vld [vmem:[%s770_s1 + $0x40] sm:$0xff]  ;;  %v53_v40 = vld [vmem:[%s770_s1 + $0x48] sm:$0xff]  ;;  %v78_v42 = vld [vmem:[%s770_s1 + $0x110] sm:$0xff] }
   0xf   :  { %150 = vmatpush.msra.mxu1 %v86_v24  ;;  %208 = vmatpush.msra.mxu3 %v87_v27  ;;  %v81_v41 = vld [vmem:[%s770_s1 + $0x128] sm:$0xff]  ;;  %v79_v43 = vld [vmem:[%s770_s1 + $0x118] sm:$0xff]  ;;  %v76_v44 = vld [vmem:[%s770_s1 + $0x100] sm:$0xff] }
  0x10   :  { %118 = vmatpush.msra.mxu0 %v60_v25  ;;  %176 = vmatpush.msra.mxu2 %v61_v26 }
  0x11   :  { %151 = vmatpush.msra.mxu1 %v84_v28  ;;  %209 = vmatpush.msra.mxu3 %v85_v31 }
  0x12   :  { %119 = vmatpush.msra.mxu0 %v58_v29  ;;  %177 = vmatpush.msra.mxu2 %v59_v30 }
  0x13   :  { %152 = vmatpush.msra.mxu1 %v82_v32  ;;  %210 = vmatpush.msra.mxu3 %v83_v35 }
  0x14   :  { %120 = vmatpush.msra.mxu0 %v56_v33  ;;  %178 = vmatpush.msra.mxu2 %v57_v34 }
  0x15   :  { %153 = vmatpush.msra.mxu1 %v80_v36 }
  0x16   :  { %121 = vmatpush.msra.mxu0 %v54_v37  ;;  %179 = vmatpush.msra.mxu2 %v55_v38 }
  0x17   :  { %15 = vsyncpa [#allocation3], 0  ;;  %v50_v45 = vld [vmem:[%s770_s1 + $0x30] sm:$0xff]  ;;  %v51_v46 = vld [vmem:[%s770_s1 + $0x38] sm:$0xff]  ;;  %211 = vmatpush.msra.mxu3 %v81_v41  ;;  %154 = vmatpush.msra.mxu1 %v78_v42  ;;  %vm98_vm0 = vcmask 719872   ;;  %vm265_vm1 = vcmask 523264  }
  0x18   :  { %122 = vmatpush.msra.mxu0 %v52_v39  ;;  %180 = vmatpush.msra.mxu2 %v53_v40  ;;  %v77_v47 = vld [vmem:[%s770_s1 + $0x108] sm:$0xff]  ;;  %v48_v49 = vld [vmem:[%s770_s1 + $0x20] sm:$0xff]  ;;  %v46_v51 = vld [vmem:[%s770_s1 + $0x10] sm:$0xff]  ;;  %vm300_vm2 = vcmask 130048   ;;  %s423_s24 = smov [#allocation2]   ;;  %vm364_vm3 = vcmask 123904  }
  0x19   :  { %v37_v48 = vld [vmem:[%s769_s0 + $0x8] sm:$0xff]  ;;  %212 = vmatpush.msra.mxu3 %v79_v43  ;;  %155 = vmatpush.msra.mxu1 %v76_v44  ;;  %v47_v52 = vld [vmem:[%s770_s1 + $0x18] sm:$0xff]  ;;  %v44_v53 = vld [vmem:[%s770_s1] sm:$0xff]  ;;  %s371_s25 = sshll.u32 %s423_s24, 4  ;;  %s372_s25 = int_to_ptr.vmem [resolvable:$true] %s371_s25 }
  0x1a   :  { %v49_v50 = vld [vmem:[%s770_s1 + $0x28] sm:$0xff]  ;;  %123 = vmatpush.msra.mxu0 %v50_v45  ;;  %181 = vmatpush.msra.mxu2 %v51_v46  ;;  %v36_v55 = vld [vmem:[%s769_s0] sm:$0xff]  ;;  %v39_v56 = vld [vmem:[%s769_s0 + $0x18] sm:$0xff] }
  0x1b   :  { %213 = vmatpush.msra.mxu3 %v77_v47  ;;  %382 = vmatmul.msk.f32.vlgmr.msra.gmra.mxu1 %vm98_vm0, %v37_v48  ;;  %v45_v54 = vld [vmem:[%s770_s1 + $0x8] sm:$0xff]  ;;  %v38_v57 = vld [vmem:[%s769_s0 + $0x10] sm:$0xff]  ;;  %v40_v59 = vld [vmem:[%s769_s0 + $0x20] sm:$0xff]  ;;  %s373_s1 = sshll.u32 %s779_s10, 4  ;;  %s374_s1 = int_to_ptr.hbm [resolvable:$true] %s373_s1 }
  0x1c   :  { %124 = vmatpush.msra.mxu0 %v48_v49  ;;  %182 = vmatpush.msra.mxu2 %v49_v50  ;;  %v41_v58 = vld [vmem:[%s769_s0 + $0x28] sm:$0xff]  ;;  %v43_v60 = vld [vmem:[%s769_s0 + $0x38] sm:$0xff]  ;;  %v42_v61 = vld [vmem:[%s769_s0 + $0x30] sm:$0xff] }
  0x1d   :  { %386 = vmatmul.msk.f32.vlgmr.msra.gmra.mxu3 %vm98_vm0, %v37_v48  ;;  %v264_v62 = vld [vmem:[%s774_s5 + $0x38] sm:$0xff]  ;;  %v263_v63 = vld [vmem:[%s774_s5 + $0x30] sm:$0xff]  ;;  %v262_v0 = vld [vmem:[%s774_s5 + $0x28] sm:$0xff] }
  0x1e   :  { %125 = vmatpush.msra.mxu0 %v46_v51  ;;  %183 = vmatpush.msra.mxu2 %v47_v52  ;;  %v261_v2 = vld [vmem:[%s774_s5 + $0x20] sm:$0xff]  ;;  %v260_v3 = vld [vmem:[%s774_s5 + $0x18] sm:$0xff]  ;;  %v259_v4 = vld [vmem:[%s774_s5 + $0x10] sm:$0xff] }
  0x1f   :  { %280 = vmatpush.msrb.mxu1 %v264_v62  ;;  %v258_v6 = vld [vmem:[%s774_s5 + $0x8] sm:$0xff]  ;;  %v257_v8 = vld [vmem:[%s774_s5] sm:$0xff]  ;;  %v339_v51 = vld [vmem:[%s777_s8 + $0x78] sm:$0xff] }
  0x20   :  { %126 = vmatpush.msra.mxu0 %v44_v53  ;;  %184 = vmatpush.msra.mxu2 %v45_v54  ;;  %v231_v18 = vld [vmem:[%s771_s2] sm:$0x3]  ;;  %v338_v52 = vld [vmem:[%s777_s8 + $0x70] sm:$0xff]  ;;  %v337_v53 = vld [vmem:[%s777_s8 + $0x68] sm:$0xff] }
  0x21   :  { %127 = vmatmul.f32.vlgmr.msra.gmra.mxu0 %v36_v55  ;;  %185 = vmatmul.f32.vlgmr.msra.gmra.mxu2 %v36_v55  ;;  %v233_v20 = vperm.slane %v231_v18, 0  ;;  %v234_v25 = vperm.slane %v231_v18, 1  ;;  %v394_v31 = vld [vmem:[%s772_s3] ss:$0 sm:$0xff]  ;;  %v335_v55 = vld [vmem:[%s777_s8 + $0x58] sm:$0xff]  ;;  %v329_v62 = vld [vmem:[%s777_s8 + $0x28] sm:$0xff] }
  0x22   :  { %281 = vmatpush.msrb.mxu1 %v263_v63  ;;  %v395_v36 = vld [vmem:[%s773_s4] ss:$0 sm:$0xff]  ;;  %344 = vmatpush.msrb.mxu0 %v339_v51 }
  0x23   :  { %383 = vmatmul.msk.f32.gmra.mxu1 %vm98_vm0, %v39_v56  ;;  %v336_v54 = vld [vmem:[%s777_s8 + $0x60] sm:$0xff] }
  0x24   :  { %282 = vmatpush.msrb.mxu1 %v262_v0  ;;  %345 = vmatpush.msrb.mxu0 %v338_v52  ;;  %v328_v63 = vld [vmem:[%s777_s8 + $0x20] sm:$0xff]  ;;  %v327_v0 = vld [vmem:[%s777_s8 + $0x18] sm:$0xff] }
  0x25   :  { %387 = vmatmul.msk.f32.gmra.mxu3 %vm98_vm0, %v39_v56  ;;  %v334_v56 = vld [vmem:[%s777_s8 + $0x50] sm:$0xff] }
  0x26   :  { %283 = vmatpush.msrb.mxu1 %v261_v2  ;;  %346 = vmatpush.msrb.mxu0 %v337_v53  ;;  %v326_v2 = vld [vmem:[%s777_s8 + $0x10] sm:$0xff] }
  0x28   :  { %284 = vmatpush.msrb.mxu1 %v260_v3  ;;  %347 = vmatpush.msrb.mxu0 %v336_v54  ;;  %v296_v3 = vld [vmem:[%s775_s6] sm:$0xff] }
  0x29   :  { %130 = vmatmul.f32.gmra.mxu0 %v38_v57  ;;  %188 = vmatmul.f32.gmra.mxu2 %v38_v57  ;;  %v333_v57 = vld [vmem:[%s777_s8 + $0x48] sm:$0xff] }
  0x2a   :  { %285 = vmatpush.msrb.mxu1 %v259_v4  ;;  %348 = vmatpush.msrb.mxu0 %v335_v55 }
  0x2b   :  { %384 = vmatmul.msk.f32.gmra.mxu1 %vm98_vm0, %v41_v58 }
  0x2c   :  { %286 = vmatpush.msrb.mxu1 %v258_v6  ;;  %349 = vmatpush.msrb.mxu0 %v334_v56 }
  0x2d   :  { %388 = vmatmul.msk.f32.gmra.mxu3 %vm98_vm0, %v41_v58  ;;  %v332_v58 = vld [vmem:[%s777_s8 + $0x40] sm:$0xff] }
  0x2e   :  { %287 = vmatpush.msrb.mxu1 %v257_v8  ;;  %350 = vmatpush.msrb.mxu0 %v333_v57 }
  0x30   :  { %351 = vmatpush.msrb.mxu0 %v332_v58 }
  0x31   :  { %133 = vmatmul.f32.gmra.mxu0 %v40_v59  ;;  %191 = vmatmul.f32.gmra.mxu2 %v40_v59  ;;  %v331_v59 = vld [vmem:[%s777_s8 + $0x38] sm:$0xff] }
  0x32   :  { %352 = vmatpush.msrb.mxu0 %v331_v59 }
  0x33   :  { %385 = vmatmul.msk.f32.gmra.mxu1 %vm98_vm0, %v43_v60 }
  0x35   :  { %389 = vmatmul.msk.f32.gmra.mxu3 %vm98_vm0, %v43_v60  ;;  %v330_v60 = vld [vmem:[%s777_s8 + $0x30] sm:$0xff] }
  0x36   :  { %353 = vmatpush.msrb.mxu0 %v330_v60 }
  0x38   :  { %354 = vmatpush.msrb.mxu0 %v329_v62 }
  0x39   :  { %136 = vmatmul.f32.gmra.mxu0 %v42_v61  ;;  %194 = vmatmul.f32.gmra.mxu2 %v42_v61 }
  0x3a   :  { %355 = vmatpush.msrb.mxu0 %v328_v63 }
  0x3c   :  { %356 = vmatpush.msrb.mxu0 %v327_v0 }
  0x3e   :  { %357 = vmatpush.msrb.mxu0 %v326_v2 }
  0x98   :  { %v157_v1 = vpop.f32.mrf.mxu1 }
  0x9e   :  { %v128_v5 = vpop.f32.mrf.mxu0 }
  0x9f   :  { %v158_v19 = vadd.f32 %v157_v1, %v128_v5  ;;  %v297_v1 = vld [vmem:[%s775_s6 + $0x8] sm:$0xff] }
  0xa0   :  { %v215_v7 = vpop.f32.mrf.mxu3  ;;  %v160_v9 = vpop.f32.mrf.mxu1  ;;  %v325_v5 = vld [vmem:[%s777_s8 + $0x8] sm:$0xff] }
  0xa1   :  { %358 = vmatpush.msrb.mxu0 %v325_v5 }
  0xa4   :  { %v186_v10 = vpop.f32.mrf.mxu2 }
  0xa5   :  { %v216_v22 = vadd.f32 %v215_v7, %v186_v10  ;;  %v324_v7 = vld [vmem:[%s777_s8] sm:$0xff] }
  0xa6   :  { %v131_v11 = vpop.f32.mrf.mxu0  ;;  %359 = vmatpush.msrb.mxu0 %v324_v7 }
  0xa7   :  { %v161_v34 = vadd.f32 %v160_v9, %v131_v11  ;;  %v295_v9 = vld [vmem:[%s776_s7] sm:$0x3] }
  0xa8   :  { %v218_v12 = vpop.f32.mrf.mxu3  ;;  %v163_v14 = vpop.f32.mrf.mxu1  ;;  %v396_v11 = vld [vmem:[%s778_s9] ss:$0 sm:$0xff] }
  0xac   :  { %v189_v13 = vpop.f32.mrf.mxu2 }
  0xad   :  { %v219_v38 = vadd.f32 %v218_v12, %v189_v13 }
  0xae   :  { %v134_v15 = vpop.f32.mrf.mxu0 }
  0xaf   :  { %v164_v17 = vadd.f32 %v163_v14, %v134_v15 }
  0xb0   :  { %v221_v16 = vpop.f32.mrf.mxu3  ;;  %v166_v27 = vpop.f32.mrf.mxu1 }
  0xb1   :  { %v227_v23 = vmax.f32 %v158_v19, %v164_v17 }
  0xb3   :  { %v237_v29 = vadd.f32 %v233_v20, %v227_v23 }
  0xb4   :  { %v192_v21 = vpop.f32.mrf.mxu2 }
  0xb5   :  { %v222_v24 = vadd.f32 %v221_v16, %v192_v21 }
  0xb6   :  { %v137_v26 = vpop.f32.mrf.mxu0 }
  0xb7   :  { %v228_v28 = vmax.f32 %v216_v22, %v222_v24  ;;  %v167_v32 = vadd.f32 %v166_v27, %v137_v26 }
  0xb8   :  { %v224_v33 = vpop.f32.mrf.mxu3 }
  0xb9   :  { %v238_v30 = vadd.f32 %v234_v25, %v228_v28  ;;  %v229_v40 = vmax.f32 %v161_v34, %v167_v32 }
  0xbb   :  { %v241_v35 = vmax.f32 %v237_v29, %v238_v30  ;;  %v239_v44 = vadd.f32 %v233_v20, %v229_v40 }
  0xbc   :  { %v195_v37 = vpop.f32.mrf.mxu2 }
  0xbd   :  { %v247_v39 = vmul.f32 %v394_v31, %v241_v35  ;;  %v225_v41 = vadd.f32 %v224_v33, %v195_v37 }
  0xbf   :  { %v230_v42 = vmax.f32 %v219_v38, %v225_v41  ;;  %v253_v43 = vadd.f32 %v395_v36, %v247_v39 }
  0xc1   :  { %v240_v45 = vadd.f32 %v234_v25, %v230_v42  ;;  %v255_v46 = vmax.f32 %v253_v43, 0.0 }
  0xc3   :  { %v242_v47 = vmax.f32 %v239_v44, %v240_v45  ;;  %390 = vmatmul.msk.f32.vlgmr.msrb.gmra.mxu1 %vm265_vm1, %v255_v46 }
  0xc5   :  { %v248_v48 = vmul.f32 %v394_v31, %v242_v47 }
  0xc7   :  { %v254_v49 = vadd.f32 %v395_v36, %v248_v48 }
  0xc9   :  { %v256_v50 = vmax.f32 %v254_v49, 0.0 }
  0xcb   :  { %391 = vmatmul.msk.f32.gmra.mxu1 %vm265_vm1, %v256_v50 }
 0x140   :  { %v289_v61 = vpop.f32.mrf.mxu1 }
 0x141   :  { %v298_v8 = vmul.f32 %v296_v3, %v289_v61 }
 0x148   :  { %v292_v4 = vpop.f32.mrf.mxu1 }
 0x149   :  { %v299_v6 = vmul.f32 %v297_v1, %v292_v4 }
 0x14b   :  { %318 = vmatpush.msrb.mxu3 %v299_v6 }
 0x14d   :  { %319 = vmatpush.msrb.mxu3 %v298_v8 }
 0x14e   :  { %392 = vmatmul.msk.f32.vlgmr.msrb.gmra.mxu3 %vm300_vm2, %v295_v9 }
 0x1d1   :  { %v321_v10 = vpop.f32.mrf.mxu3 }
 0x1d2   :  { %360 = vmatmul.f32.vlgmr.msrb.gmra.mxu0 %v321_v10 }
 0x24f   :  { %v361_v12 = vpop.f32.mrf.mxu0 }
 0x250   :  { %v362_v13 = vadd.f32 %v396_v11, %v361_v12 }
 0x252   :  { %365 = vst.msk [vmem:[#allocation2] sm:$0x3] %vm364_vm3, %v362_v13 }
 0x253   :  { %376 = dma.vmem_to_hbm [thread:$0]  %s372_s25, 32, %s374_s1, [#allocation3]  }
 0x254   :  { %421 = dma.done.wait [#allocation3], 32  }
 0x255   :  { %422 = vsyncadd [#allocation3], 4294967264 }
 0x256   :  { %381 = vsyncpa [#allocation3], 1 }

</bundles_post_ra>
